<compile_context>
chip_gen: v6e
topology: v6e:2x2x1
jax: 0.10.0
libtpu: 0.0.40
codegen_flags: <defaults>
</compile_context>

<pallas_src>
import jax
import jax.numpy as jnp
from jax.experimental import pallas as pl
from jax.experimental.pallas import tpu as pltpu


def _fuse_kernel(xh_ref, xl_ref, wh_ref, bh_ref, w1_ref, b1_ref, w2_ref, b2_ref,
                 out_ref):
    # xh_ref: (1, Ch, TM)   xl_ref: (1, Co, TM)   out_ref: (1, Co, TM)
    # wh: (Co, Ch)  w1: (Cb, Co)  w2: (Co, Cb)  (activation dtype); biases (C, 1) f32.
    xh = xh_ref[0]                                   # (Ch, TM)
    xl = xl_ref[0]                                   # (Co, TM)
    xl_f32 = xl.astype(jnp.float32)

    # Default MXU precision everywhere (bf16 operand passes, f32 accumulation).
    # TODO(synk): block-diagonal fuse of the wh@xh and w1@xl matmuls (~33% fewer vmatmul
    # pushes) -- hidden under the HBM roofline at default precision, so skipped.
    # feature_high: Conv1x1 + folded BN + ReLU        -> (Co, TM), lane-dense
    h = jnp.dot(wh_ref[...], xh, preferred_element_type=jnp.float32) + bh_ref[...]
    h = jnp.maximum(h, 0.0)

    # bottomup: Conv1x1 + BN + ReLU -> Conv1x1 + BN + Sigmoid
    z = jnp.dot(w1_ref[...], xl, preferred_element_type=jnp.float32) + b1_ref[...]
    z = jnp.maximum(z, 0.0).astype(w2_ref.dtype)     # (Cb, TM)
    s = jnp.dot(w2_ref[...], z, preferred_element_type=jnp.float32) + b2_ref[...]
    w = jax.nn.sigmoid(s)                            # (Co, TM), f32 (EUP)

    out_ref[0] = (w * h + xl_f32).astype(out_ref.dtype)


def _vmem_capacity_bytes():
    try:
        info = pltpu.get_tpu_info()
        cap = getattr(info, "vmem_capacity_bytes", None)
        if cap:
            return int(cap)
    except Exception:
        pass
    return 64 * 1024 * 1024          # assume the smallest (v7x per-TC) when unknown


def _pick_spatial_tile(hw, n, per_lane_bytes, budget_bytes):
    """Largest lane tile that (a) fits the VMEM budget, (b) leaves >= ~4 grid steps
    total (>= 2 per TensorCore on v7x), (c) is a multiple of 512 when possible
    (v6e/v7x MXU result tiles), else a multiple of 128."""
    if hw <= 128:
        return hw                                   # full-extent block is layout-legal
    tm = budget_bytes // per_lane_bytes
    needed_steps = -(-4 // max(n, 1))               # ceil(4 / n) spatial steps wanted
    tm = min(tm, -(-hw // needed_steps))            # keep >= needed_steps steps
    tm = min(tm, 32768)
    if tm >= 512:
        tm = (tm // 512) * 512
    else:
        tm = max(128, (tm // 128) * 128)
    return min(tm, ((hw + 127) // 128) * 128)


def bottom_up_local_fuse(xh_nchw, xl_nchw, params, *, out_dtype=None,
                         tile_cap=None, vmem_limit_bytes=None):
    """xh_nchw: (N, Ch, H, W), xl_nchw: (N, Co, H, W).  Returns (N, Co, H, W).

    Activations are streamed in whatever dtype the caller provides (f32 or bf16) --
    no wrapper-side cast (that would add a full extra HBM read+write pass).
    Output dtype defaults to the low-branch input dtype."""
    n, ch, hgt, wid = xh_nchw.shape
    nl, co, hl, wl = xl_nchw.shape
    assert (n, hgt, wid) == (nl, hl, wl)
    hw = hgt * wid

    # Free reshapes: channels on sublanes, H*W on lanes.
    xh = xh_nchw.reshape(n, ch, hw)
    xl = xl_nchw.reshape(n, co, hw)

    act_dtype = jnp.result_type(xh.dtype, xl.dtype)
    if out_dtype is None:
        out_dtype = xl.dtype

    # Weights are tiny; casting them to the activation dtype costs nothing and keeps
    # the MXU operands matched.  Biases stay f32.
    wh = params["wh"].astype(act_dtype)              # (Co, Ch)
    w1 = params["w1"].astype(act_dtype)              # (Cb, Co)
    w2 = params["w2"].astype(act_dtype)              # (Co, Cb)
    bh = params["bh"].astype(jnp.float32)
    b1 = params["b1"].astype(jnp.float32)
    b2 = params["b2"].astype(jnp.float32)
    cb = w1.shape[0]

    # --- per-lane VMEM accounting ------------------------------------------------
    #   double-buffered xh / xl input blocks + double-buffered output block
    #   + in-kernel f32 intermediates (xl_f32, h, z, s/w, product) -- conservative.
    xh_b = jnp.dtype(xh.dtype).itemsize
    xl_b = jnp.dtype(xl.dtype).itemsize
    out_b = jnp.dtype(out_dtype).itemsize
    per_lane = (2 * ch * xh_b + 2 * co * xl_b        # double-buffered input blocks
                + 2 * co * out_b                     # double-buffered output block
                + (4 * co + 2 * cb) * 4)             # f32 intermediates
    vmem_cap = _vmem_capacity_bytes()
    if vmem_limit_bytes is None:
        # <= 64 MiB scoped on v5e/v6e (128 MiB VMEM), <= 32 MiB on v7x (64 MiB VMEM).
        vmem_limit_bytes = min(64 * 1024 * 1024, vmem_cap // 2)
    budget = (vmem_limit_bytes * 3) // 4             # headroom for compiler scratch

    tm = _pick_spatial_tile(hw, n, per_lane, budget)
    if tile_cap is not None:
        tm = min(tm, max(128, (tile_cap // 128) * 128))

    # Masked ragged tail block is safe: every op in the kernel is lane-local
    # (channel contractions run along sublanes only).
    grid = (n, pl.cdiv(hw, tm))

    # TODO(synk): fold 2 batch elements per block to fill bf16 sublane packing (Co < 16).
    out = pl.pallas_call(
        _fuse_kernel,
        out_shape=jax.ShapeDtypeStruct((n, co, hw), out_dtype),
        grid_spec=pltpu.PrefetchScalarGridSpec(
            num_scalar_prefetch=0,
            grid=grid,
            in_specs=[
                pl.BlockSpec((1, ch, tm), lambda b, j: (b, 0, j)),   # xh block
                pl.BlockSpec((1, co, tm), lambda b, j: (b, 0, j)),   # xl block
                pl.BlockSpec((co, ch), lambda b, j: (0, 0)),         # wh (tiny)
                pl.BlockSpec((co, 1), lambda b, j: (0, 0)),          # bh
                pl.BlockSpec((cb, co), lambda b, j: (0, 0)),         # w1
                pl.BlockSpec((cb, 1), lambda b, j: (0, 0)),          # b1
                pl.BlockSpec((co, cb), lambda b, j: (0, 0)),         # w2
                pl.BlockSpec((co, 1), lambda b, j: (0, 0)),          # b2
            ],
            out_specs=pl.BlockSpec((1, co, tm), lambda b, j: (b, 0, j)),
        ),
        compiler_params=pltpu.CompilerParams(
            dimension_semantics=("parallel", "parallel"),
            vmem_limit_bytes=int(vmem_limit_bytes),
        ),
    )(xh, xl, wh, bh, w1, b1, w2, b2)

    # Free reshape back to NCHW.
    return out.reshape(n, co, hgt, wid)


def make_params(key, in_high, out_channels, r=4, eps=1e-5):
    """Deterministic synthetic params: Conv1x1 weights + BN (inference mode) with the
    BN folded into the conv.  Weights (Cout, Cin), biases (Cout, 1), all f32."""
    cb = out_channels // r

    def fold(key, cin, cout):
        k = jax.random.split(key, 6)
        w = jax.random.normal(k[0], (cout, cin), jnp.float32) * 0.1
        b = jax.random.normal(k[1], (cout,), jnp.float32) * 0.1
        gamma = 1.0 + 0.1 * jax.random.normal(k[2], (cout,), jnp.float32)
        beta = 0.1 * jax.random.normal(k[3], (cout,), jnp.float32)
        mean = 0.1 * jax.random.normal(k[4], (cout,), jnp.float32)
        var = 0.5 + jax.random.uniform(k[5], (cout,), jnp.float32)
        scale = gamma / jnp.sqrt(var + eps)
        w_eff = w * scale[:, None]
        b_eff = (b - mean) * scale + beta
        return w_eff, b_eff.reshape(cout, 1)

    k0, k1, k2 = jax.random.split(key, 3)
    wh, bh = fold(k0, in_high, out_channels)
    w1, b1 = fold(k1, out_channels, cb)
    w2, b2 = fold(k2, cb, out_channels)
    return {"wh": wh, "bh": bh, "w1": w1, "b1": b1, "w2": w2, "b2": b2}


def _reference(xh_nchw, xl_nchw, p):
    """Pure-JAX f32 reference (NCHW), full precision."""
    def conv1x1(x, w, b):
        y = jnp.einsum("nchw,dc->ndhw", x.astype(jnp.float32), w,
                       precision=jax.lax.Precision.HIGHEST)
        return y + b.reshape(1, -1, 1, 1)

    h = jax.nn.relu(conv1x1(xh_nchw, p["wh"], p["bh"]))
    z = jax.nn.relu(conv1x1(xl_nchw, p["w1"], p["b1"]))
    w = jax.nn.sigmoid(conv1x1(z, p["w2"], p["b2"]))
    return w * h + xl_nchw.astype(jnp.float32)


if __name__ == "__main__":
    key = jax.random.PRNGKey(0)
    k_xh, k_xl, k_p, k_xh2, k_xl2 = jax.random.split(key, 5)

    N, Ch, Cl, H, W, r = 2, 6, 8, 16, 16, 4   # in_low == out_channels == 8, bottleneck = 2
    xh = jax.random.normal(k_xh, (N, Ch, H, W), jnp.float32)
    xl = jax.random.normal(k_xl, (N, Cl, H, W), jnp.float32)

    params = make_params(k_p, in_high=Ch, out_channels=Cl, r=r)
    ref = _reference(xh, xl, params)

    # f32 activations in HBM, f32 output; default MXU precision.
    out = jax.block_until_ready(bottom_up_local_fuse(xh, xl, params))
    assert out.shape == (N, Cl, H, W) and out.dtype == jnp.float32
    assert jnp.allclose(out, ref, atol=5e-2, rtol=5e-2), "f32 path mismatch vs reference"

    # Caller-supplied bf16 activations + bf16 output: ~half the HBM traffic.
    xh_b = xh.astype(jnp.bfloat16)
    xl_b = xl.astype(jnp.bfloat16)
    ref_b = _reference(xh_b.astype(jnp.float32), xl_b.astype(jnp.float32), params)
    out_b = jax.block_until_ready(bottom_up_local_fuse(xh_b, xl_b, params))
    assert out_b.dtype == jnp.bfloat16
    assert jnp.allclose(out_b.astype(jnp.float32), ref_b, atol=5e-2, rtol=5e-2), \
        "bf16 path mismatch vs reference"

    # Ragged spatial size (H*W = 360, not a multiple of 128) exercises the masked tail.
    H2, W2 = 20, 18
    xh2 = jax.random.normal(k_xh2, (N, Ch, H2, W2), jnp.float32)
    xl2 = jax.random.normal(k_xl2, (N, Cl, H2, W2), jnp.float32)
    ref2 = _reference(xh2, xl2, params)
    out2 = jax.block_until_ready(bottom_up_local_fuse(xh2, xl2, params))
    assert jnp.allclose(out2, ref2, atol=5e-2, rtol=5e-2), "ragged-tail mismatch vs reference"

    print("KERNEL_OK")
</pallas_src>

<mosaic_0001>
module attributes {stable_mosaic.version = 11 : i64} {
  func.func @_fuse_kernel(%arg0: i32, %arg1: i32, %arg2: memref<1x6x128xf32, #tpu.memory_space<vmem>>, %arg3: memref<1x8x128xf32, #tpu.memory_space<vmem>>, %arg4: memref<8x6xf32, #tpu.memory_space<vmem>>, %arg5: memref<8x1xf32, #tpu.memory_space<vmem>>, %arg6: memref<2x8xf32, #tpu.memory_space<vmem>>, %arg7: memref<2x1xf32, #tpu.memory_space<vmem>>, %arg8: memref<8x2xf32, #tpu.memory_space<vmem>>, %arg9: memref<8x1xf32, #tpu.memory_space<vmem>>, %arg10: memref<1x8x128xf32, #tpu.memory_space<vmem>>) attributes {dimension_semantics = [#tpu.dimension_semantics<parallel>, #tpu.dimension_semantics<parallel>], iteration_bounds = array<i64: 2, 2>, scalar_prefetch = 0 : i64, scratch_operands = 0 : i64, tpu.core_type = #tpu.core_type<tc>, window_params = [{transform_indices = @transform_0, window_bounds = array<i64: 1, 6, 128>}, {transform_indices = @transform_1, window_bounds = array<i64: 1, 8, 128>}, {pipeline_mode = #tpu.pipeline_mode<synchronous>, transform_indices = @transform_2, window_bounds = array<i64: 8, 6>}, {pipeline_mode = #tpu.pipeline_mode<synchronous>, transform_indices = @transform_3, window_bounds = array<i64: 8, 1>}, {pipeline_mode = #tpu.pipeline_mode<synchronous>, transform_indices = @transform_4, window_bounds = array<i64: 2, 8>}, {pipeline_mode = #tpu.pipeline_mode<synchronous>, transform_indices = @transform_5, window_bounds = array<i64: 2, 1>}, {pipeline_mode = #tpu.pipeline_mode<synchronous>, transform_indices = @transform_6, window_bounds = array<i64: 8, 2>}, {pipeline_mode = #tpu.pipeline_mode<synchronous>, transform_indices = @transform_7, window_bounds = array<i64: 8, 1>}, {transform_indices = @transform_8, window_bounds = array<i64: 1, 8, 128>}]} {
    %c0 = arith.constant 0 : index
    %c0_0 = arith.constant 0 : index
    %c0_1 = arith.constant 0 : index
    %0 = vector.load %arg2[%c0, %c0_0, %c0_1] : memref<1x6x128xf32, #tpu.memory_space<vmem>>, vector<1x6x128xf32>
    %1 = vector.shape_cast %0 : vector<1x6x128xf32> to vector<6x128xf32>
    %c0_2 = arith.constant 0 : index
    %c0_3 = arith.constant 0 : index
    %c0_4 = arith.constant 0 : index
    %2 = vector.load %arg3[%c0_2, %c0_3, %c0_4] : memref<1x8x128xf32, #tpu.memory_space<vmem>>, vector<1x8x128xf32>
    %3 = vector.shape_cast %2 : vector<1x8x128xf32> to vector<8x128xf32>
    %c0_5 = arith.constant 0 : index
    %c0_6 = arith.constant 0 : index
    %4 = vector.load %arg4[%c0_5, %c0_6] : memref<8x6xf32, #tpu.memory_space<vmem>>, vector<8x6xf32>
    %cst = arith.constant dense<0.000000e+00> : vector<8x128xf32>
    %5 = tpu.matmul %4, %1, %cst {dimension_numbers = #tpu.dot_dimension_numbers<[1], [0], [0], [1], [0, 0, 1, 1], [], []>} : vector<8x6xf32>, vector<6x128xf32>, vector<8x128xf32> -> vector<8x128xf32>
    %c0_7 = arith.constant 0 : index
    %c0_8 = arith.constant 0 : index
    %6 = vector.load %arg5[%c0_7, %c0_8] : memref<8x1xf32, #tpu.memory_space<vmem>>, vector<8x1xf32>
    %7 = vector.broadcast %6 : vector<8x1xf32> to vector<8x128xf32>
    %8 = arith.addf %5, %7 : vector<8x128xf32>
    %cst_9 = arith.constant 0.000000e+00 : f32
    %9 = vector.broadcast %cst_9 : f32 to vector<8x128xf32>
    %10 = arith.maximumf %8, %9 : vector<8x128xf32>
    %c0_10 = arith.constant 0 : index
    %c0_11 = arith.constant 0 : index
    %11 = vector.load %arg6[%c0_10, %c0_11] : memref<2x8xf32, #tpu.memory_space<vmem>>, vector<2x8xf32>
    %cst_12 = arith.constant dense<0.000000e+00> : vector<2x128xf32>
    %12 = tpu.matmul %11, %3, %cst_12 {dimension_numbers = #tpu.dot_dimension_numbers<[1], [0], [0], [1], [0, 0, 1, 1], [], []>} : vector<2x8xf32>, vector<8x128xf32>, vector<2x128xf32> -> vector<2x128xf32>
    %c0_13 = arith.constant 0 : index
    %c0_14 = arith.constant 0 : index
    %13 = vector.load %arg7[%c0_13, %c0_14] : memref<2x1xf32, #tpu.memory_space<vmem>>, vector<2x1xf32>
    %14 = vector.broadcast %13 : vector<2x1xf32> to vector<2x128xf32>
    %15 = arith.addf %12, %14 : vector<2x128xf32>
    %cst_15 = arith.constant 0.000000e+00 : f32
    %16 = vector.broadcast %cst_15 : f32 to vector<2x128xf32>
    %17 = arith.maximumf %15, %16 : vector<2x128xf32>
    %c0_16 = arith.constant 0 : index
    %c0_17 = arith.constant 0 : index
    %18 = vector.load %arg8[%c0_16, %c0_17] : memref<8x2xf32, #tpu.memory_space<vmem>>, vector<8x2xf32>
    %cst_18 = arith.constant dense<0.000000e+00> : vector<8x128xf32>
    %19 = tpu.matmul %18, %17, %cst_18 {dimension_numbers = #tpu.dot_dimension_numbers<[1], [0], [0], [1], [0, 0, 1, 1], [], []>} : vector<8x2xf32>, vector<2x128xf32>, vector<8x128xf32> -> vector<8x128xf32>
    %c0_19 = arith.constant 0 : index
    %c0_20 = arith.constant 0 : index
    %20 = vector.load %arg9[%c0_19, %c0_20] : memref<8x1xf32, #tpu.memory_space<vmem>>, vector<8x1xf32>
    %21 = vector.broadcast %20 : vector<8x1xf32> to vector<8x128xf32>
    %22 = arith.addf %19, %21 : vector<8x128xf32>
    %23 = arith.negf %22 : vector<8x128xf32>
    %24 = math.exp %23 : vector<8x128xf32>
    %cst_21 = arith.constant 1.000000e+00 : f32
    %25 = vector.broadcast %cst_21 : f32 to vector<8x128xf32>
    %26 = arith.addf %25, %24 : vector<8x128xf32>
    %27 = arith.divf %25, %26 : vector<8x128xf32>
    %28 = arith.mulf %27, %10 : vector<8x128xf32>
    %29 = arith.addf %28, %3 : vector<8x128xf32>
    %c0_22 = arith.constant 0 : index
    %c0_23 = arith.constant 0 : index
    %c0_24 = arith.constant 0 : index
    %30 = vector.load %arg10[%c0_22, %c0_23, %c0_24] : memref<1x8x128xf32, #tpu.memory_space<vmem>>, vector<1x8x128xf32>
    %31 = vector.shape_cast %30 : vector<1x8x128xf32> to vector<8x128xf32>
    %32 = vector.shape_cast %29 : vector<8x128xf32> to vector<1x8x128xf32>
    tpu.vector_store %arg10[%c0_22, %c0_23, %c0_24], %32 {strides = array<i32>} : memref<1x8x128xf32, #tpu.memory_space<vmem>>, vector<1x8x128xf32>,
    return
  }
  func.func @transform_0(%arg0: i32, %arg1: i32) -> (i32, i32, i32) {
    %c0_i32 = arith.constant 0 : i32
    %c0_i32_0 = arith.constant 0 : i32
    return %arg0, %c0_i32, %arg1 : i32, i32, i32
  }
  func.func @transform_1(%arg0: i32, %arg1: i32) -> (i32, i32, i32) {
    %c0_i32 = arith.constant 0 : i32
    %c0_i32_0 = arith.constant 0 : i32
    return %arg0, %c0_i32, %arg1 : i32, i32, i32
  }
  func.func @transform_2(%arg0: i32, %arg1: i32) -> (i32, i32) {
    %c0_i32 = arith.constant 0 : i32
    %c0_i32_0 = arith.constant 0 : i32
    %c0_i32_1 = arith.constant 0 : i32
    return %c0_i32, %c0_i32_0 : i32, i32
  }
  func.func @transform_3(%arg0: i32, %arg1: i32) -> (i32, i32) {
    %c0_i32 = arith.constant 0 : i32
    %c0_i32_0 = arith.constant 0 : i32
    %c0_i32_1 = arith.constant 0 : i32
    return %c0_i32, %c0_i32_0 : i32, i32
  }
  func.func @transform_4(%arg0: i32, %arg1: i32) -> (i32, i32) {
    %c0_i32 = arith.constant 0 : i32
    %c0_i32_0 = arith.constant 0 : i32
    %c0_i32_1 = arith.constant 0 : i32
    return %c0_i32, %c0_i32_0 : i32, i32
  }
  func.func @transform_5(%arg0: i32, %arg1: i32) -> (i32, i32) {
    %c0_i32 = arith.constant 0 : i32
    %c0_i32_0 = arith.constant 0 : i32
    %c0_i32_1 = arith.constant 0 : i32
    return %c0_i32, %c0_i32_0 : i32, i32
  }
  func.func @transform_6(%arg0: i32, %arg1: i32) -> (i32, i32) {
    %c0_i32 = arith.constant 0 : i32
    %c0_i32_0 = arith.constant 0 : i32
    %c0_i32_1 = arith.constant 0 : i32
    return %c0_i32, %c0_i32_0 : i32, i32
  }
  func.func @transform_7(%arg0: i32, %arg1: i32) -> (i32, i32) {
    %c0_i32 = arith.constant 0 : i32
    %c0_i32_0 = arith.constant 0 : i32
    %c0_i32_1 = arith.constant 0 : i32
    return %c0_i32, %c0_i32_0 : i32, i32
  }
  func.func @transform_8(%arg0: i32, %arg1: i32) -> (i32, i32, i32) {
    %c0_i32 = arith.constant 0 : i32
    %c0_i32_0 = arith.constant 0 : i32
    return %arg0, %c0_i32, %arg1 : i32, i32, i32
  }
}

</mosaic_0001>

<bundles_post_ra>
// kernel: tpu_custom_call.1
= control target key start
LH: loop header
LB: loop body
LE: loop exit
PB: predicated region body
PF: predicated region fallthrough
CT: control target
= control target key end

     0   :  { %s1149_s0 = inlined_call_operand.vmem [shape: f32[2,6,256], index: 0, kind: input, shape index: {}]   ;;  %s1150_s1 = inlined_call_operand.vmem [shape: f32[2,8,256], index: 1, kind: input, shape index: {}]   ;;  %s1151_s2 = inlined_call_operand.vmem [shape: f32[8,6], index: 2, kind: input, shape index: {}]   ;;  %s1152_s3 = inlined_call_operand.vmem [shape: f32[8,1], index: 3, kind: input, shape index: {}]   ;;  %s1153_s4 = inlined_call_operand.vmem [shape: f32[2,8], index: 4, kind: input, shape index: {}]   ;;  %s1154_s5 = inlined_call_operand.vmem [shape: f32[2,1], index: 5, kind: input, shape index: {}]   ;;  %s1155_s6 = inlined_call_operand.vmem [shape: f32[8,2], index: 6, kind: input, shape index: {}]   ;;  %s1156_s7 = inlined_call_operand.vmem [shape: f32[8,1], index: 7, kind: input, shape index: {}]   ;;  %s1157_s8 = inlined_call_operand.hbm [shape: f32[2,8,256], index: 8, kind: output, shape index: {}]  }
   0x1   :  { %1161 = sst [smem:[#allocation8_spill]] %s1154_s5 }
   0x2   :  { %13 = vsyncpa [#allocation3], 0 }
   0x3   :  { %15 = vsyncpa [#allocation3 + $0x1], 0  ;;  %s1001_s27 = smov 0   ;;  %s1003_s28 = smov 0  }
   0x4   :  { %s1005_s29 = smov 0   ;;  %s1007_s30 = smov 0  }
   0x5   :  { %s1009_s9 = smov 0   ;;  %s1011_s10 = smov 0  }
   0x6   :  { %s1013_s11 = smov 0   ;;  %s1015_s12 = smov 0  }
   0x7 LB: > { %1162 = sst [smem:[#allocation5_spill]] %s946_s11  ;;  %s736_s13 = sadd.s32 4294967295, %s950_s12   ;;  %s950_s12 = sphi %s1015_s12, %s21_s12   ;;  %s946_s11 = sphi %s1013_s11, %s1170_s11   ;;  %s942_s10 = sphi %s1011_s10, %s1175_s10   ;;  %s938_s9 = sphi %s1009_s9, %s1168_s9   ;;  %s934_s30 = sphi %s1007_s30, %s1174_s30   ;;  %s930_s29 = sphi %s1005_s29, %s1173_s29   ;;  %s926_s28 = sphi %s1003_s28, %s1172_s28   ;;  %s922_s27 = sphi %s1001_s27, %s1171_s27  }
   0x8   : > { %s737_s14 = sadd.s32 4294967294, %s950_s12   ;;  %s30_s15 = sadd.s32 1, %s942_s10 }
   0x9   : > { %p31_p0 = scmp.ge.s32.totalorder %s30_s15, 2  ;;  %s33_s16 = sadd.s32 1, %s946_s11 }
   0xa   : > { %p234_p1 = scmp.ne.s32.totalorder %s930_s29, %s926_s28  ;;  %p235_p2 = scmp.eq.s32.totalorder %s736_s13, 3 }
   0xb   : > { %s1177_s15 = smov (%p31_p0, %s30_s15), 0  ;;  %s1179_s16 = smov (!%p31_p0, %s33_s16), %s946_s11 }
   0xc   : > { %1163 = sst [smem:[#allocation6_spill]] %s1177_s15  ;;  %s220_s17 = ssub.s32 %s942_s10, %s1177_s15 }
   0xd   : > { %p1052_p3 = por %p235_p2, %p234_p1  ;;  %p35_p4 = scmp.ge.s32.totalorder %s1179_s16, 2 }
   0xe   : > { %p240_p5 = scmp.ne.s32.totalorder %s926_s28, %s922_s27  ;;  %p241_p6 = scmp.eq.s32.totalorder %s737_s14, 3 }
   0xf   : > { %p740_p7 = scmp.ge.s32.totalorder %s950_s12, 1  ;;  %s1181_s16 = smov (%p35_p4, %s1179_s16), 0 }
  0x10   : > { %1165 = sst [smem:[#allocation7_spill]] %s1181_s16  ;;  %p1061_p8 = por %p241_p6, %p240_p5 }
  0x11   : > { %p299_p9 = scmp.lt.s32.totalorder %s950_s12, 5  ;;  %s219_s20 = ssub.s32 %s946_s11, %s1181_s16 }
  0x12   : > { %s224_s21 = sadd.s32 1, %s930_s29  ;;  %s221_s22 = sor.u32 %s220_s17, %s219_s20 }
  0x13   : > { %p300_p10 = pnand %p740_p7, %p299_p9  ;;  %p222_p11 = scmp.eq.s32.totalorder %s221_s22, 0 }
  0x14   : > { %p344_p12 = scmp.lt.s32.totalorder (!%p300_p10), %s938_s9, 1  ;;  %p346_p13 = scmp.lt.s32.totalorder (!%p300_p10), %s934_s30, 1 }
  0x15   : > { %s1070_s23 = scalar_select %p222_p11, %s930_s29, %s224_s21  }
  0x16   : > { %303 = sbr.rel (%p300_p10) target bundleno = 477 (0x1dd), region = 52  ;;  %s1167_s5 = sld [smem:[#allocation8_spill]] (!%p300_p10) }
  0x17   : > { %s341_s20 = sand.u32 (!%p300_p10), 1, %s926_s28  }
  0x18   : > { %s625_s15 = scalar_lea.sflag (!%p300_p10), [#allocation3], %s341_s20 }
  0x1b   : > { %v952_v0 = vmov 0.0   ;;  %vm953_vm0 = vmmov 0   ;;  %s345_s26 = scalar_select %p344_p12, %s938_s9, 1  ;;  %v954_v2 = vmov 0   ;;  %v531_v3 = vld [vmem:[%s1156_s7] sm:$0xff]  ;;  %vm455_vm1 = vcmask 64512  }
  0x1c   : > { %768 = vmatprep.subr.mxu1 %v952_v0  ;;  %770 = vmatprep.mubr.msk.f32.mxu1 %vm953_vm0, %v952_v0  ;;  %v449_v1 = vld [vmem:[%s1167_s5] sm:$0x3]  ;;  %s347_s13 = scalar_select %p346_p13, %s934_s30, 1  ;;  %vm373_vm2 = vcmask 1045504   ;;  %vm369_vm3 = vcmask 48128   ;;  %vm541_vm4 = vcmask 1041408  }
  0x1d   : > { %852 = vset.pattern.permute.xlu0 %v954_v2  ;;  %763 = vmatprep.subr.mxu0 %v952_v0  ;;  %s742_s14 = sshll.u32 %s345_s26, 1  ;;  %v448_v4 = vld [vmem:[%s1153_s4] sm:$0x3]  ;;  %vm537_vm5 = vcmask 15360  }
  0x1e   : > { %452 = vperm.xlu0 %852, %v449_v1   ;;  %765 = vmatprep.mubr.msk.f32.mxu0 %vm953_vm0, %v952_v0  ;;  %s349_s21 = sadd.s32 %s742_s14, %s347_s13  ;;  %v362_v7 = vld [vmem:[%s1151_s2] sm:$0xff] }
  0x1f   : > { %853 = vset.pattern.permute.xlu1 %v954_v2  ;;  %s743_s22 = sshll.u32 %s349_s21, 3  ;;  %v363_v8 = vld [vmem:[%s1152_s3] sm:$0xff]  ;;  %s741_s21 = sshll.u32 %s341_s20, 3 }
  0x20   : > { %s359_s24 = scalar_lea.vmem %s1150_s1, %s743_s22  ;;  %s351_s17 = scalar_lea.vmem %s1149_s0, %s743_s22  ;;  %366 = vperm.xlu1 %853, %v363_v8   ;;  %v530_v14 = vld [vmem:[%s1155_s6] sm:$0xff] }
  0x21   : > { %v361_v5 = vld [vmem:[%s359_s24] sm:$0xff]  ;;  %s753_s22 = sshll.u32 %s938_s9, 1  ;;  %s343_s26 = scalar_lea.vmem [#allocation2], %s741_s21 }
  0x22   : > { %534 = vperm.xlu0 %852, %v531_v3   ;;  %769 = vmatpush3.msra.mxu1 %v361_v5  ;;  %v360_v6 = vld [vmem:[%s351_s17] sm:$0x3f]  ;;  %s636_s24 = sadd.s32 %s934_s30, %s753_s22  ;;  %s640_s17 = sshll.u32 %s343_s26, 4  ;;  %s641_s17 = int_to_ptr.vmem [resolvable:$true] %s640_s17 }
  0x23   : > { %771 = vmatmul.mubr.msk.f32.vlgmr.msra.gmra.mxu1 %vm455_vm1, %v448_v4  ;;  %764 = vmatpush3.msk.msra.mxu0 %vm373_vm2, %v360_v6  ;;  %s754_s25 = sshll.u32 %s636_s24, 7  ;;  %s858_s11 = scalar_lea.vmem %s641_s17, 128 }
  0x24   : > { %766 = vmatmul.mubr.msk.f32.vlgmr.msra.gmra.mxu0 %vm369_vm3, %v362_v7  ;;  %773 = vmatprep.subr.mxu0 %v952_v0  ;;  %s638_s5 = scalar_lea.hbm %s1157_s8, %s754_s25  ;;  %p859_p0 = scmp.ne.s32.totalorder %s641_s17, %s858_s11 }
  0x25   : > { %775 = vmatprep.mubr.msk.f32.mxu0 %vm953_vm0, %v952_v0  ;;  %s955_s30 = smov [#allocation2]  }
  0x26   : > { %p860_p1 = pnand %p859_p0, %p1052_p3  ;;  %s862_s9 = sshll.u32 %s955_s30, 4  ;;  %s863_s9 = int_to_ptr.vmem [resolvable:$false] %s862_s9 }
  0x27   : > { %s864_s16 = scalar_lea.vmem %s863_s9, 256  ;;  %p865_p4 = scmp.lt.s32.totalorder %s641_s17, %s863_s9 }
  0x28   : > { %p861_p2 = pneg %p860_p1  ;;  %p866_p5 = scmp.lt.s32.totalorder %s864_s16, %s858_s11 }
  0x2a   : > { %p867_p6 = por %p866_p5, %p865_p4 }
  0x2c   : > { %p868_p7 = pnand %p867_p6, %p861_p2 }
  0x99   : > { %v453_v9 = vpop.permute.xlu0 %452 }
  0x9b   : > { %v367_v24 = vpop.permute.xlu1 %366 }
  0x9d   : > { %v535_v17 = vpop.permute.xlu0 %534 }
  0xe3   : > { %v525_v10 = vpop.f32.mrf.mxu1 }
  0xe4   : > { %v526_v11 = vadd.f32 %v525_v10, %v453_v9  ;;  %v443_v15 = vpop.f32.mrf.mxu0 }
  0xe5   : > { %v772_v12 = vpop.f32.mrf.mxu1  ;;  %v444_v25 = vadd.f32 %v443_v15, %v367_v24 }
  0xe6   : > { %v529_v13 = vmax.f32 %v526_v11, 0.0  ;;  %v767_v16 = vpop.f32.mrf.mxu0 }
  0xe7   : > { %v447_v26 = vmax.f32 %v444_v25, 0.0 }
  0xe8   : > { %774 = vmatpush3.msk.msra.mxu0 %vm541_vm4, %v529_v13 }
  0xe9   : > { %776 = vmatmul.mubr.msk.f32.vlgmr.msra.gmra.mxu0 %vm537_vm5, %v530_v14 }
 0x1a9   : > { %v611_v18 = vpop.f32.mrf.mxu0 }
 0x1aa   : > { %v612_v19 = vadd.f32 %v611_v18, %v535_v17 }
 0x1ab   : > { %v777_v20 = vpop.f32.mrf.mxu0 }
 0x1ac   : > { %v751_v21 = vmul.f32 -1.442695, %v612_v19 }
 0x1ae   : > { %854 = vpow2.f32 %v751_v21 }
 0x1bb   : > { %v855_v22 = vpop.eup %854 }
 0x1bc   : > { %v618_v23 = vadd.f32 1.0, %v855_v22 }
 0x1be   : > { %856 = vrcp.f32 %v618_v23 }
 0x1cb   : > { %v857_v27 = vpop.eup %856 }
 0x1cc   : > { %v621_v28 = vmul.f32 %v857_v27, %v447_v26 }
 0x1ce   : > { %v622_v29 = vadd.f32 %v621_v28, %v361_v5 }
 0x1d0   : > { %623 = vst [vmem:[%s343_s26] sm:$0xff] %v622_v29 }
 0x1d1   : > { %871 = shalt.err (!%p868_p7)
}
 0x1d2   : > { %s872_s21 = scalar_lea.hbm %s638_s5, 128  ;;  %s876_s24 = scalar_lea.hbm %s1157_s8, 512 }
 0x1d3   : > { %p873_p9 = scmp.ne.s32.totalorder %s638_s5, %s872_s21  ;;  %p877_p12 = scmp.lt.s32.totalorder %s638_s5, %s1157_s8 }
 0x1d4   : > { %p878_p13 = scmp.lt.s32.totalorder %s876_s24, %s872_s21 }
 0x1d5   : > { %p874_p10 = pnand %p873_p9, %p1052_p3 }
 0x1d6   : > { %p879_p0 = por %p878_p13, %p877_p12 }
 0x1d7   : > { %p875_p11 = pneg %p874_p10 }
 0x1d9   : > { %p880_p1 = pnand %p879_p0, %p875_p11 }
 0x1db   : > { %883 = shalt.err (!%p880_p1)
}
 0x1dc   : > { %778 = dma.vmem_to_hbm [thread:$0]  (%p1052_p3), %s641_s17, 128, %s638_s5, %s625_s15  }
 0x1dd PF: > { %p784_p2 = scmp.ge.s32.totalorder %s950_s12, 2  ;;  %s652_s13 = sand.u32 1, %s922_s27  }
 0x1de   : > { %s653_s14 = scalar_lea.sflag [#allocation3], %s652_s13 }
 0x1df   : > { %p781_p4 = pnand %p784_p2, %p1061_p8 }
 0x1e1   : > { %p782_p5 = pneg %p781_p4 }
 0x1e3   : > { %917 = dma.done.wait (%p782_p5), %s653_s14, 128  }
 0x1e4   : > { %919 = vsyncadd (%p782_p5), %s653_s14, 4294967168  ;;  %s21_s12 = sadd.s32 1, %s950_s12   ;;  %s1168_s9 = sld [smem:[#allocation5_spill]] }
 0x1e5   : > { %p18_p6 = scmp.ge.s32.totalorder %s21_s12, 6   ;;  %s1169_s18 = sld [smem:[#allocation6_spill]] }
 0x1e6   : > { %s1170_s11 = sld [smem:[#allocation7_spill]]  ;;  %s1171_s27 = smov %s926_s28 }
 0x1e7   : > { %s1172_s28 = smov %s930_s29  ;;  %s1173_s29 = smov %s1070_s23 }
 0x1e8   : > { %s1174_s30 = smov %s942_s10  ;;  %20 = sbr.rel (!%p18_p6) target bundleno = 7 (0x7), region = 90 }
 0x1eb   : > { %s1175_s10 = smov %s1169_s18 }
 0x1ed   :  { %658 = vsyncpa [#allocation3], 1 }
 0x1ee   :  { %660 = vsyncpa [#allocation3 + $0x1], 1 }

</bundles_post_ra>
